<compile_context>
chip_gen: v7x
topology: tpu7x:2x2x1
jax: 0.10.0
libtpu: 0.0.40
codegen_flags: <defaults>
</compile_context>

<pallas_src>
import math

import jax
import jax.numpy as jnp
from jax.experimental import pallas as pl
from jax.experimental.pallas import tpu as pltpu


def _bilinear_matrix(in_size: int, out_size: int, align_corners: bool) -> jnp.ndarray:
    """Row-stochastic (out_size, in_size) matrix reproducing PyTorch's 1-D linear
    interpolation index arithmetic."""
    dst = jnp.arange(out_size, dtype=jnp.float32)
    if align_corners:
        if out_size > 1:
            src = dst * (float(in_size - 1) / float(out_size - 1))
        else:
            src = jnp.zeros((out_size,), jnp.float32)
    else:
        src = (dst + 0.5) * (float(in_size) / float(out_size)) - 0.5
        src = jnp.maximum(src, 0.0)  # PyTorch clamps negative source coords to 0
    i0 = jnp.clip(jnp.floor(src).astype(jnp.int32), 0, in_size - 1)
    i1 = jnp.clip(i0 + 1, 0, in_size - 1)
    w1 = jnp.clip(src - i0.astype(jnp.float32), 0.0, 1.0)
    w0 = 1.0 - w1
    m = jnp.zeros((out_size, in_size), jnp.float32)
    rows = jnp.arange(out_size)
    m = m.at[rows, i0].add(w0)
    m = m.at[rows, i1].add(w1)
    return m


def _round_up(x: int, m: int) -> int:
    return ((x + m - 1) // m) * m


def _pick_block_batch(nc, h_in, w_in, h_out, w_out, itemsize):
    """Choose how many (N,C) planes to process per grid step."""
    # VMEM footprint of one plane, accounting for (8, 128) tile padding.
    in_plane = _round_up(h_in, 8) * _round_up(w_in, 128)
    out_plane = _round_up(h_out, 8) * _round_up(w_out, 128)
    blk = 2 * (in_plane + out_plane) * itemsize     # double-buffered in/out blocks
    tmp = (in_plane + 2 * out_plane) * 4            # in-kernel f32 temporaries
    per_plane = blk + tmp
    # Stay comfortably inside the smallest scoped-VMEM default (16 MiB on v5e),
    # leaving headroom for weights and compiler scratch.
    budget = 12 * 1024 * 1024
    cap = max(1, min(128, budget // per_plane))
    tb = 1
    for d in range(1, nc + 1):
        if nc % d == 0 and d <= cap:
            tb = d
    # Prefer a grid length >= 2 (megacore sharding on v7x) when it costs at most a
    # factor-of-2 in block size.
    if tb == nc and nc > 1:
        for d in range(nc - 1, 0, -1):
            if nc % d == 0 and d <= cap and 2 * d >= nc:
                tb = d
                break
    return tb


def _interp_kernel(x_ref, wh_ref, wwt_ref, o_ref):
    # x_ref:  (TB, H_in, W_in)   native dtype
    # wh_ref: (H_out, H_in)      compute dtype
    # wwt_ref:(W_in, W_out)      compute dtype
    # o_ref:  (TB, H_out, W_out)
    tb, h_in, w_in = x_ref.shape
    h_out = wh_ref.shape[0]
    w_out = wwt_ref.shape[1]

    x = x_ref[...]
    wwt = wwt_ref[...]
    wh = wh_ref[...]

    # ---- width interpolation -------------------------------------------------
    if h_in % 8 == 0:
        # Big-M matmul: fold (TB, H_in) into the M dimension (layout-trivial reshape
        # since H_in is a multiple of the sublane tile).
        xw = jnp.dot(x.reshape(tb * h_in, w_in), wwt,
                     preferred_element_type=jnp.float32)          # (TB*H_in, W_out)
        xw = xw.reshape(tb, h_in, w_out)
    else:
        # Fallback keeps every reshape tile-aligned: batched contraction over W_in.
        wwt_b = jnp.broadcast_to(wwt, (tb, w_in, w_out))
        xw = jnp.einsum("bhv,bvw->bhw", x, wwt_b,
                        preferred_element_type=jnp.float32)        # (TB, H_in, W_out)
    xw = xw.astype(x.dtype)  # bf16 inputs: keep MXU operands bf16 (no-op for f32)

    # ---- height interpolation (batched contraction over H_in) -----------------
    wh_b = jnp.broadcast_to(wh, (tb, h_out, h_in))
    out = jnp.einsum("boh,bhw->bow", wh_b, xw,
                     preferred_element_type=jnp.float32)           # (TB, H_out, W_out)

    o_ref[...] = out.astype(o_ref.dtype)


def interpolate(x, scale_factor, mode="bilinear", align_corners=False):
    """Pallas equivalent of nn.functional.interpolate on NCHW input (bilinear only)."""
    if mode != "bilinear":
        # TODO(synk): other modes (nearest, bicubic) not implemented; LSeg only uses bilinear.
        raise NotImplementedError(f"only bilinear mode implemented, got {mode!r}")

    N, C, H_in, W_in = x.shape
    if isinstance(scale_factor, (tuple, list)):
        sf_h, sf_w = scale_factor
    else:
        sf_h = sf_w = scale_factor
    H_out = int(math.floor(H_in * sf_h))
    W_out = int(math.floor(W_in * sf_w))

    # Bilinear weight matrices built once in plain JAX (glue, negligible cost).
    wh = _bilinear_matrix(H_in, H_out, align_corners)            # (H_out, H_in)
    wwt = _bilinear_matrix(W_in, W_out, align_corners).T         # (W_in, W_out)
    # Only downcast the weights when activations are already bf16 (keeps f32 exact).
    if x.dtype == jnp.bfloat16:
        wh = wh.astype(jnp.bfloat16)
        wwt = wwt.astype(jnp.bfloat16)

    NC = N * C
    itemsize = jnp.dtype(x.dtype).itemsize
    TB = _pick_block_batch(NC, H_in, W_in, H_out, W_out, itemsize)

    x_flat = x.reshape(NC, H_in, W_in)  # free: contiguity-preserving view of NCHW

    flops = 2 * NC * (H_in * W_in * W_out + H_out * H_in * W_out)
    bytes_accessed = (NC * (H_in * W_in + H_out * W_out)
                      + H_out * H_in + W_in * W_out) * itemsize
    cost = pl.CostEstimate(flops=flops, transcendentals=0,
                           bytes_accessed=bytes_accessed)

    out_flat = pl.pallas_call(
        _interp_kernel,
        out_shape=jax.ShapeDtypeStruct((NC, H_out, W_out), x.dtype),
        grid_spec=pltpu.PrefetchScalarGridSpec(
            num_scalar_prefetch=0,
            grid=(NC // TB,),
            in_specs=[
                pl.BlockSpec((TB, H_in, W_in), lambda i: (i, 0, 0)),
                pl.BlockSpec((H_out, H_in), lambda i: (0, 0)),
                pl.BlockSpec((W_in, W_out), lambda i: (0, 0)),
            ],
            out_specs=pl.BlockSpec((TB, H_out, W_out), lambda i: (i, 0, 0)),
        ),
        compiler_params=pltpu.CompilerParams(
            dimension_semantics=("parallel",),
            vmem_limit_bytes=32 * 1024 * 1024,
        ),
        cost_estimate=cost,
    )(x_flat, wh, wwt)

    return out_flat.reshape(N, C, H_out, W_out)


class Interpolate:
    """Mirror of the PyTorch module (no parameters)."""

    def __init__(self, scale_factor, mode, align_corners=False):
        self.scale_factor = scale_factor
        self.mode = mode
        self.align_corners = align_corners

    def __call__(self, x):
        return interpolate(x, self.scale_factor, self.mode, self.align_corners)


if __name__ == "__main__":
    key = jax.random.PRNGKey(0)
    x = jax.random.normal(key, (2, 4, 16, 16), dtype=jnp.float32)  # NCHW

    # Matches the usage in lseg_blocks: Interpolate(scale_factor=2, mode="bilinear",
    # align_corners=True)
    mod = Interpolate(scale_factor=2, mode="bilinear", align_corners=True)
    y = mod(x)
    jax.block_until_ready(y)
    assert y.shape == (2, 4, 32, 32), y.shape

    # Reference: same dense bilinear-weight matrices applied in pure JAX.
    wh_t = _bilinear_matrix(16, 32, True)
    ww_t = _bilinear_matrix(16, 32, True)
    ref_t = jnp.einsum("oh,nchw,pw->ncop", wh_t, x, ww_t)
    assert jnp.allclose(y, ref_t, atol=1e-5), float(jnp.max(jnp.abs(y - ref_t)))

    # Also exercise align_corners=False (the module's default).
    y_f = Interpolate(scale_factor=2, mode="bilinear", align_corners=False)(x)
    jax.block_until_ready(y_f)
    wh_f = _bilinear_matrix(16, 32, False)
    ww_f = _bilinear_matrix(16, 32, False)
    ref_f = jnp.einsum("oh,nchw,pw->ncop", wh_f, x, ww_f)
    assert jnp.allclose(y_f, ref_f, atol=1e-5), float(jnp.max(jnp.abs(y_f - ref_f)))

    print("KERNEL_OK")
</pallas_src>

<mosaic_0001>
module attributes {stable_mosaic.version = 11 : i64} {
  func.func @_interp_kernel(%arg0: i32, %arg1: memref<4x16x16xf32, #tpu.memory_space<vmem>>, %arg2: memref<32x16xf32, #tpu.memory_space<vmem>>, %arg3: memref<16x32xf32, #tpu.memory_space<vmem>>, %arg4: memref<4x32x32xf32, #tpu.memory_space<vmem>>) attributes {dimension_semantics = [#tpu.dimension_semantics<parallel>], iteration_bounds = array<i64: 2>, scalar_prefetch = 0 : i64, scratch_operands = 0 : i64, tpu.core_type = #tpu.core_type<tc>, window_params = [{transform_indices = @transform_0, window_bounds = array<i64: 4, 16, 16>}, {pipeline_mode = #tpu.pipeline_mode<synchronous>, transform_indices = @transform_1, window_bounds = array<i64: 32, 16>}, {pipeline_mode = #tpu.pipeline_mode<synchronous>, transform_indices = @transform_2, window_bounds = array<i64: 16, 32>}, {transform_indices = @transform_3, window_bounds = array<i64: 4, 32, 32>}]} {
    %c0 = arith.constant 0 : index
    %c0_0 = arith.constant 0 : index
    %c0_1 = arith.constant 0 : index
    %0 = vector.load %arg1[%c0, %c0_0, %c0_1] : memref<4x16x16xf32, #tpu.memory_space<vmem>>, vector<4x16x16xf32>
    %c0_2 = arith.constant 0 : index
    %c0_3 = arith.constant 0 : index
    %1 = vector.load %arg3[%c0_2, %c0_3] : memref<16x32xf32, #tpu.memory_space<vmem>>, vector<16x32xf32>
    %c0_4 = arith.constant 0 : index
    %c0_5 = arith.constant 0 : index
    %2 = vector.load %arg2[%c0_4, %c0_5] : memref<32x16xf32, #tpu.memory_space<vmem>>, vector<32x16xf32>
    %3 = vector.shape_cast %0 : vector<4x16x16xf32> to vector<64x16xf32>
    %cst = arith.constant dense<0.000000e+00> : vector<64x32xf32>
    %4 = tpu.matmul %3, %1, %cst {dimension_numbers = #tpu.dot_dimension_numbers<[1], [0], [0], [1], [0, 0, 1, 1], [], []>} : vector<64x16xf32>, vector<16x32xf32>, vector<64x32xf32> -> vector<64x32xf32>
    %5 = vector.shape_cast %4 : vector<64x32xf32> to vector<4x16x32xf32>
    %6 = vector.shape_cast %2 : vector<32x16xf32> to vector<1x32x16xf32>
    %7 = vector.broadcast %6 : vector<1x32x16xf32> to vector<4x32x16xf32>
    "tpu.trace_start"() <{level = 10 : i32, message = "boh,bhw->bow"}> : () -> ()
    %cst_6 = arith.constant dense<0.000000e+00> : vector<4x32x32xf32>
    %8 = tpu.matmul %7, %5, %cst_6 {dimension_numbers = #tpu.dot_dimension_numbers<[2], [1], [1], [2], [0, 0, 0, 1, 1, 2], [0], [0]>} : vector<4x32x16xf32>, vector<4x16x32xf32>, vector<4x32x32xf32> -> vector<4x32x32xf32>
    "tpu.trace_stop"() : () -> ()
    %c0_7 = arith.constant 0 : index
    %c0_8 = arith.constant 0 : index
    %c0_9 = arith.constant 0 : index
    %9 = vector.load %arg4[%c0_7, %c0_8, %c0_9] : memref<4x32x32xf32, #tpu.memory_space<vmem>>, vector<4x32x32xf32>
    tpu.vector_store %arg4[%c0_7, %c0_8, %c0_9], %8 {strides = array<i32>} : memref<4x32x32xf32, #tpu.memory_space<vmem>>, vector<4x32x32xf32>,
    return
  }
  func.func @transform_0(%arg0: i32) -> (i32, i32, i32) {
    %c0_i32 = arith.constant 0 : i32
    %c0_i32_0 = arith.constant 0 : i32
    %c0_i32_1 = arith.constant 0 : i32
    return %arg0, %c0_i32, %c0_i32_0 : i32, i32, i32
  }
  func.func @transform_1(%arg0: i32) -> (i32, i32) {
    %c0_i32 = arith.constant 0 : i32
    %c0_i32_0 = arith.constant 0 : i32
    %c0_i32_1 = arith.constant 0 : i32
    return %c0_i32, %c0_i32_0 : i32, i32
  }
  func.func @transform_2(%arg0: i32) -> (i32, i32) {
    %c0_i32 = arith.constant 0 : i32
    %c0_i32_0 = arith.constant 0 : i32
    %c0_i32_1 = arith.constant 0 : i32
    return %c0_i32, %c0_i32_0 : i32, i32
  }
  func.func @transform_3(%arg0: i32) -> (i32, i32, i32) {
    %c0_i32 = arith.constant 0 : i32
    %c0_i32_0 = arith.constant 0 : i32
    %c0_i32_1 = arith.constant 0 : i32
    return %arg0, %c0_i32, %c0_i32_0 : i32, i32, i32
  }
}

</mosaic_0001>

<bundles_post_ra>
// kernel: tpu_custom_call.1
= control target key start
LH: loop header
LB: loop body
LE: loop exit
PB: predicated region body
PF: predicated region fallthrough
CT: control target
= control target key end

     0   :  { %8 = vsyncpa [#allocation3], 0  ;;  %s1361_s0 = inlined_call_operand.hbm [shape: f32[8,16,16], index: 0, kind: input, shape index: {}]   ;;  %s1362_s1 = inlined_call_operand.vmem [shape: f32[32,16], index: 1, kind: input, shape index: {}]   ;;  %s1363_s2 = inlined_call_operand.vmem [shape: f32[16,32], index: 2, kind: input, shape index: {}]   ;;  %s1364_s3 = inlined_call_operand.hbm [shape: f32[8,32,32], index: 3, kind: output, shape index: {}]  }
   0x1   :  { %10 = vsyncpa [#allocation3 + $0x1], 0 }
   0x2   :  { %11 = vsyncpa [#allocation4], 0 }
   0x3   :  { %13 = vsyncpa [#allocation4 + $0x1], 0  ;;  %s1121_s12 = smov 0   ;;  %s1123_s13 = smov 0  }
   0x4   :  { %s1125_s14 = smov 0   ;;  %s1127_s15 = smov 0  }
   0x5 LB: > { %s1142_s16 = sadd.s32 4294967295, %s1093_s15   ;;  %s793_s17 = sadd.s32 4294967294, %s1093_s15   ;;  %s1093_s15 = sphi %s1127_s15, %s1377_s15   ;;  %s1089_s14 = sphi %s1125_s14, %s1376_s14   ;;  %s1085_s13 = sphi %s1123_s13, %s1375_s13   ;;  %s1081_s12 = sphi %s1121_s12, %s1374_s12  }
   0x6   : > { %s1146_s18 = sadd.s32 1, %s1093_s15   ;;  %s26_s19 = sadd.s32 1, %s1089_s14 }
   0x7   : > { %s23_s20 = ssub.s32 %s1093_s15, %s1146_s18  ;;  %p33_p0 = scmp.ne.s32.totalorder %s1089_s14, %s1085_s13 }
   0x8   : > { %p24_p1 = scmp.eq.s32.totalorder %s23_s20, 0  ;;  %p34_p2 = scmp.eq.s32.totalorder %s1093_s15, 0 }
   0x9   : > { %p39_p3 = scmp.ne.s32.totalorder %s1085_s13, %s1081_s12  ;;  %p40_p4 = scmp.eq.s32.totalorder %s1142_s16, 0 }
   0xa   : > { %s1158_s21 = scalar_select %p24_p1, %s1089_s14, %s26_s19  }
   0xb   : > { %p1160_p5 = por %p34_p2, %p33_p0  ;;  %p1164_p6 = por %p40_p4, %p39_p3 }
   0xc   : > { %p105_p7 = scmp.eq.s32.totalorder %s1142_s16, 1  ;;  %p111_p8 = scmp.eq.s32.totalorder %s793_s17, 1 }
   0xd   : > { %p959_p10 = scmp.lt.s32.totalorder %s1093_s15, 2  ;;  %s137_s26 = sand.u32 1, %s1089_s14  }
   0xe   : > { %p1171_p11 = por %p105_p7, %p33_p0  ;;  %p1175_p12 = por %p111_p8, %p39_p3 }
   0xf   : > { %s834_s27 = sshll.u32 %s1093_s15, 10  ;;  %s796_s28 = sshll.u32 %s137_s26, 6 }
  0x10   : > { %s1368_s24 = scalar_select %p1171_p11, 1, 0 }
  0x11   : > { %s1369_s25 = scalar_select %p1175_p12, 1, 0 }
  0x12   : > { %s1184_s4 = scalar_lea.hbm %s1361_s0, %s834_s27  ;;  %s141_s5 = scalar_lea.vmem [#allocation2], %s796_s28 }
  0x13   : > { %s149_s6 = sshll.u32 %s141_s5, 4  ;;  %p1188_p13 = pnand %p959_p10, %p1160_p5  ;;  %s1192_s6 = int_to_ptr.vmem [resolvable:$true] %s149_s6 }
  0x14   : > { %s1194_s8 = scalar_lea.sflag [#allocation3], %s137_s26  ;;  %s997_s9 = scalar_lea.hbm %s1184_s4, 1024 }
  0x15   : > { %p998_p0 = scmp.ne.s32.totalorder %s1184_s4, %s997_s9  ;;  %p999_p1 = pneg %p1188_p13 }
  0x16   : > { %s1002_s17 = scalar_lea.hbm %s1361_s0, 2048  ;;  %p1003_p4 = scmp.lt.u32.totalorder %s1184_s4, %s1361_s0 }
  0x17   : > { %p1000_p2 = pnand %p999_p1, %p998_p0  ;;  %p1004_p5 = scmp.lt.u32.totalorder %s1002_s17, %s997_s9 }
  0x18   : > { %p1006_p8 = scmp.lt.u32.totalorder %s997_s9, %s1184_s4 }
  0x19   : > { %p1001_p3 = pneg %p1000_p2  ;;  %p1005_p7 = por %p1004_p5, %p1003_p4 }
  0x1b   : > { %p1007_p10 = por %p1006_p8, %p1005_p7 }
  0x1d   : > { %p1008_p9 = pnand %p1007_p10, %p1001_p3 }
  0x1f   : > { %1011 = shalt.err (!%p1008_p9)
}
  0x20   : > { %s1012_s22 = scalar_lea.vmem %s1192_s6, 1024  ;;  %s1095_s26 = smov [#allocation2]  }
  0x21   : > { %p1013_p0 = scmp.ne.s32.totalorder %s1192_s6, %s1012_s22  ;;  %s1017_s27 = sshll.u32 %s1095_s26, 4  ;;  %s1018_s27 = int_to_ptr.vmem [resolvable:$false] %s1017_s27 }
  0x22   : > { %s1019_s28 = scalar_lea.vmem %s1018_s27, 2048  ;;  %p1020_p11 = scmp.lt.s32.totalorder %s1192_s6, %s1018_s27 }
  0x23   : > { %p1015_p2 = pnand %p1013_p0, %p999_p1  ;;  %p1021_p4 = scmp.lt.s32.totalorder %s1019_s28, %s1012_s22 }
  0x25   : > { %p1016_p12 = pneg %p1015_p2  ;;  %p1022_p5 = por %p1021_p4, %p1020_p11 }
  0x27   : > { %p1023_p7 = pnand %p1022_p5, %p1016_p12 }
  0x29   : > { %1026 = shalt.err (!%p1023_p7)
}
  0x2a   : > { %s1096_s29 = smov 128   ;;  %s1097_s30 = smov 8  }
  0x2b   : > { %954 = dma.hbm_to_vmem [thread:$0]  (!%p1188_p13), %s1184_s4, 1024, %s1192_s6, %s1194_s8, %s1096_s29, %s1096_s29, %s1097_s30  }
  0x2c   : > { %p800_p9 = scmp.ge.s32.totalorder %s1093_s15, 1  ;;  %p157_p1 = scmp.lt.s32.totalorder %s1093_s15, 3 }
  0x2e   : > { %p158_p3 = pnand %p800_p9, %p157_p1 }
  0x2f   : > { %s1225_s5 = sand.u32 (!%p158_p3), 1, %s1085_s13  }
  0x30   : > { %161 = sbr.rel (%p158_p3) target bundleno = 530 (0x212), region = 32  ;;  %s801_s9 = sshll.u32 (!%p158_p3), %s1225_s5, 6 }
  0x31   : > { %s164_s10 = scalar_lea.sflag (!%p158_p3), [#allocation3], %s1225_s5  ;;  %s167_s11 = scalar_lea.vmem (!%p158_p3), [#allocation2], %s801_s9 }
  0x37   : > { %1072 = dma.done.wait (%p1164_p6), %s164_s10, 1024  }
  0x38   : > { %1074 = vsyncadd (%p1164_p6), %s164_s10, 4294966272  ;;  %vm206_vm0 = vcmask 130048   ;;  %v200_v0 = vld [vmem:[%s1363_s2] sm:$0xff]  ;;  %v201_v1 = vld [vmem:[%s1363_s2 + $0x8] sm:$0xff]  ;;  %s802_s29 = sshll.u32 %s1225_s5, 7  ;;  %vm688_vm1 = vcmask 261120  }
  0x39   : > { %v192_v2 = vld [vmem:[%s167_s11] sm:$0xff]  ;;  %v927_v3 = vpack.c.bf16 %v201_v1, %v200_v0  ;;  %v193_v4 = vld [vmem:[%s167_s11 + $0x8] sm:$0xff]  ;;  %v194_v5 = vld [vmem:[%s167_s11 + $0x10] sm:$0xff]  ;;  %s1276_s30 = scalar_lea.vmem [#allocation5], %s802_s29  ;;  %s836_s9 = sshll.u32 %s1142_s16, 11 }
  0x3a   : > { %875 = vmatprep.mubr.msk.f32.mxu0 %vm206_vm0, %v192_v2  ;;  %v195_v6 = vld [vmem:[%s167_s11 + $0x18] sm:$0xff]  ;;  %v196_v7 = vld [vmem:[%s167_s11 + $0x20] sm:$0xff]  ;;  %v197_v8 = vld [vmem:[%s167_s11 + $0x28] sm:$0xff]  ;;  %s720_s10 = sshll.u32 %s1276_s30, 4  ;;  %s1311_s6 = scalar_lea.hbm %s1364_s3, %s836_s9  ;;  %s1313_s10 = int_to_ptr.vmem [resolvable:$true] %s720_s10 }
  0x3b   : > { %928 = vmatprep.subr.bf16.mxu0 %v927_v3  ;;  %v198_v9 = vld [vmem:[%s167_s11 + $0x30] sm:$0xff]  ;;  %v199_v10 = vld [vmem:[%s167_s11 + $0x38] sm:$0xff]  ;;  %v202_v11 = vld [vmem:[%s1362_s1] sm:$0xff]  ;;  %s706_s16 = scalar_lea.sflag [#allocation4], %s1225_s5  ;;  %s1027_s7 = scalar_lea.vmem %s1313_s10, 2048 }
  0x3c   : > { %930 = vmatpush3.bf16.msra.mxu0 %v927_v3  ;;  %891 = vmatprep.mubr.msk.f32.mxu1 %vm206_vm0, %v202_v11  ;;  %v203_v17 = vld [vmem:[%s1362_s1 + $0x8] sm:$0xff]  ;;  %v204_v19 = vld [vmem:[%s1362_s1 + $0x10] sm:$0xff]  ;;  %v205_v22 = vld [vmem:[%s1362_s1 + $0x18] sm:$0xff]  ;;  %p1028_p6 = scmp.ne.s32.totalorder %s1313_s10, %s1027_s7  ;;  %p1371_p11 = scmp.ne.s32.totalorder %s1368_s24, 0 }
  0x3d   : > { %s1098_s8 = smov [#allocation5]  }
  0x3e   : > { %p1029_p12 = pnand %p1028_p6, %p1371_p11  ;;  %s1031_s23 = sshll.u32 %s1098_s8, 4  ;;  %s1032_s23 = int_to_ptr.vmem [resolvable:$false] %s1031_s23 }
  0x3f   : > { %876 = vmatmul.mubr.msk.f32.vlgmr.msra.gmra.mrb[0].mxu0 %vm206_vm0, %v193_v4  ;;  %s1033_s17 = scalar_lea.vmem %s1032_s23, 4096  ;;  %p1034_p8 = scmp.lt.s32.totalorder %s1313_s10, %s1032_s23 }
  0x40   : > { %878 = vmatprep.mubr.msk.f32.mxu0 %vm206_vm0, %v194_v5  ;;  %p1030_p13 = pneg %p1029_p12  ;;  %p1035_p10 = scmp.lt.s32.totalorder %s1033_s17, %s1027_s7 }
  0x42   : > { %p1036_p0 = por %p1035_p10, %p1034_p8 }
  0x43   : > { %879 = vmatmul.mubr.msk.f32.gmra.mrb[2].mxu0 %vm206_vm0, %v195_v6 }
  0x44   : > { %881 = vmatprep.mubr.msk.f32.mxu0 %vm206_vm0, %v196_v7  ;;  %p1037_p2 = pnand %p1036_p0, %p1030_p13 }
  0x47   : > { %882 = vmatmul.mubr.msk.f32.gmra.mrb[4].mxu0 %vm206_vm0, %v197_v8 }
  0x48   : > { %884 = vmatprep.mubr.msk.f32.mxu0 %vm206_vm0, %v198_v9 }
  0x4b   : > { %885 = vmatmul.mubr.msk.f32.gmra.mrb[6].mxu0 %vm206_vm0, %v199_v10 }
  0x4c   : > { %911 = vmatprep.mubr.msk.f32.mxu0 %vm206_vm0, %v202_v11 }
 0x112   : > { %v877_v12 = vpop.f32.mrb[0].mxu0 }
 0x113   : > { %v297_v13 = vpop.f32.mrb[1].mxu0 }
 0x114   : > { %v931_v14 = vpack.c.bf16 %v877_v12, %v297_v13 }
 0x116   : > { %v880_v15 = vpop.f32.mrb[2].mxu0  ;;  %932 = vmatprep.subr.bf16.mxu1 %v931_v14 }
 0x117   : > { %v307_v16 = vpop.f32.mrb[3].mxu0  ;;  %934 = vmatpush3.bf16.msra.mxu1 %v931_v14 }
 0x118   : > { %v935_v18 = vpack.c.bf16 %v880_v15, %v307_v16 }
 0x11a   : > { %v883_v20 = vpop.f32.mrb[4].mxu0  ;;  %936 = vmatprep.subr.bf16.mxu1 %v935_v18  ;;  %892 = vmatmul.mubr.msk.f32.vlgmr.msra.gmra.mrb[0].mxu1 %vm206_vm0, %v203_v17 }
 0x11b   : > { %v317_v21 = vpop.f32.mrb[5].mxu0  ;;  %938 = vmatpush3.bf16.msra.mxu1 %v935_v18  ;;  %894 = vmatprep.mubr.msk.f32.mxu1 %vm206_vm0, %v204_v19 }
 0x11c   : > { %v939_v23 = vpack.c.bf16 %v883_v20, %v317_v21 }
 0x11e   : > { %940 = vmatprep.subr.bf16.mxu0 %v939_v23  ;;  %v886_v24 = vpop.f32.mrb[6].mxu0  ;;  %895 = vmatmul.mubr.msk.f32.gmra.mrb[2].mxu1 %vm206_vm0, %v205_v22 }
 0x11f   : > { %942 = vmatpush3.bf16.msra.mxu0 %v939_v23  ;;  %v327_v25 = vpop.f32.mrb[7].mxu0  ;;  %901 = vmatprep.mubr.msk.f32.mxu1 %vm206_vm0, %v202_v11 }
 0x120   : > { %v943_v26 = vpack.c.bf16 %v886_v24, %v327_v25 }
 0x122   : > { %944 = vmatprep.subr.bf16.mxu1 %v943_v26  ;;  %902 = vmatmul.mubr.msk.f32.vlgmr.msra.gmra.mrb[4].mxu1 %vm206_vm0, %v203_v17 }
 0x123   : > { %946 = vmatpush3.bf16.msra.mxu1 %v943_v26  ;;  %904 = vmatprep.mubr.msk.f32.mxu1 %vm206_vm0, %v204_v19 }
 0x124   : > { %912 = vmatmul.mubr.msk.f32.vlgmr.msra.gmra.mrb[8].mxu0 %vm206_vm0, %v203_v17 }
 0x125   : > { %914 = vmatprep.mubr.msk.f32.mxu0 %vm206_vm0, %v204_v19 }
 0x126   : > { %905 = vmatmul.mubr.msk.f32.gmra.mrb[6].mxu1 %vm206_vm0, %v205_v22 }
 0x127   : > { %921 = vmatprep.mubr.msk.f32.mxu1 %vm206_vm0, %v202_v11 }
 0x128   : > { %915 = vmatmul.mubr.msk.f32.gmra.mrb[10].mxu0 %vm206_vm0, %v205_v22 }
 0x12a   : > { %922 = vmatmul.mubr.msk.f32.vlgmr.msra.gmra.mrb[8].mxu1 %vm206_vm0, %v203_v17 }
 0x12b   : > { %924 = vmatprep.mubr.msk.f32.mxu1 %vm206_vm0, %v204_v19 }
 0x12e   : > { %925 = vmatmul.mubr.msk.f32.gmra.mrb[10].mxu1 %vm206_vm0, %v205_v22 }
 0x1ed   : > { %v893_v27 = vpop.f32.mrb[0].mxu1 }
 0x1ee   : > { %690 = vst.msk [vmem:[%s1276_s30 + $0x8] sm:$0xff] %vm688_vm1, %v893_v27  ;;  %v414_v28 = vpop.f32.mrb[1].mxu1 }
 0x1ef   : > { %689 = vst.msk [vmem:[%s1276_s30] sm:$0xff] %vm688_vm1, %v414_v28 }
 0x1f1   : > { %v896_v29 = vpop.f32.mrb[2].mxu1 }
 0x1f2   : > { %692 = vst.msk [vmem:[%s1276_s30 + $0x18] sm:$0xff] %vm688_vm1, %v896_v29  ;;  %v424_v30 = vpop.f32.mrb[3].mxu1 }
 0x1f3   : > { %691 = vst.msk [vmem:[%s1276_s30 + $0x10] sm:$0xff] %vm688_vm1, %v424_v30 }
 0x1f5   : > { %v903_v31 = vpop.f32.mrb[4].mxu1 }
 0x1f6   : > { %694 = vst.msk [vmem:[%s1276_s30 + $0x28] sm:$0xff] %vm688_vm1, %v903_v31  ;;  %v499_v32 = vpop.f32.mrb[5].mxu1 }
 0x1f7   : > { %693 = vst.msk [vmem:[%s1276_s30 + $0x20] sm:$0xff] %vm688_vm1, %v499_v32  ;;  %v913_v33 = vpop.f32.mrb[8].mxu0 }
 0x1f8   : > { %698 = vst.msk [vmem:[%s1276_s30 + $0x48] sm:$0xff] %vm688_vm1, %v913_v33  ;;  %v584_v34 = vpop.f32.mrb[9].mxu0 }
 0x1f9   : > { %v906_v35 = vpop.f32.mrb[6].mxu1  ;;  %697 = vst.msk [vmem:[%s1276_s30 + $0x40] sm:$0xff] %vm688_vm1, %v584_v34 }
 0x1fa   : > { %696 = vst.msk [vmem:[%s1276_s30 + $0x38] sm:$0xff] %vm688_vm1, %v906_v35  ;;  %v509_v36 = vpop.f32.mrb[7].mxu1 }
 0x1fb   : > { %695 = vst.msk [vmem:[%s1276_s30 + $0x30] sm:$0xff] %vm688_vm1, %v509_v36  ;;  %v916_v37 = vpop.f32.mrb[10].mxu0 }
 0x1fc   : > { %700 = vst.msk [vmem:[%s1276_s30 + $0x58] sm:$0xff] %vm688_vm1, %v916_v37  ;;  %v594_v38 = vpop.f32.mrb[11].mxu0 }
 0x1fd   : > { %v923_v39 = vpop.f32.mrb[8].mxu1  ;;  %699 = vst.msk [vmem:[%s1276_s30 + $0x50] sm:$0xff] %vm688_vm1, %v594_v38 }
 0x1fe   : > { %702 = vst.msk [vmem:[%s1276_s30 + $0x68] sm:$0xff] %vm688_vm1, %v923_v39  ;;  %v669_v40 = vpop.f32.mrb[9].mxu1 }
 0x1ff   : > { %701 = vst.msk [vmem:[%s1276_s30 + $0x60] sm:$0xff] %vm688_vm1, %v669_v40 }
 0x201   : > { %v926_v41 = vpop.f32.mrb[10].mxu1 }
 0x202   : > { %704 = vst.msk [vmem:[%s1276_s30 + $0x78] sm:$0xff] %vm688_vm1, %v926_v41  ;;  %v679_v42 = vpop.f32.mrb[11].mxu1 }
 0x203   : > { %703 = vst.msk [vmem:[%s1276_s30 + $0x70] sm:$0xff] %vm688_vm1, %v679_v42 }
 0x204   : > { %1040 = shalt.err (!%p1037_p2)
}
 0x205   : > { %s1041_s19 = scalar_lea.hbm %s1311_s6, 2048  ;;  %s1045_s26 = scalar_lea.hbm %s1364_s3, 4096 }
 0x206   : > { %p1042_p4 = scmp.ne.s32.totalorder %s1311_s6, %s1041_s19  ;;  %p1046_p9 = scmp.lt.u32.totalorder %s1311_s6, %s1364_s3 }
 0x207   : > { %p1047_p1 = scmp.lt.u32.totalorder %s1045_s26, %s1041_s19  ;;  %p1049_p6 = scmp.lt.u32.totalorder %s1041_s19, %s1311_s6 }
 0x208   : > { %p1043_p5 = pnand %p1042_p4, %p1371_p11 }
 0x209   : > { %p1048_p3 = por %p1047_p1, %p1046_p9 }
 0x20a   : > { %p1044_p7 = pneg %p1043_p5 }
 0x20b   : > { %p1050_p12 = por %p1049_p6, %p1048_p3 }
 0x20d   : > { %p1051_p13 = pnand %p1050_p12, %p1044_p7 }
 0x20f   : > { %1054 = shalt.err (!%p1051_p13)
}
 0x210   : > { %s1099_s29 = smov 128   ;;  %s1100_s30 = smov 8  }
 0x211   : > { %949 = dma.vmem_to_hbm [thread:$0]  (%p1371_p11), %s1313_s10, 2048, %s1311_s6, %s706_s16, %s1099_s29, %s1099_s29, %s1100_s30  }
 0x212 PF: > { %s735_s9 = sand.u32 1, %s1081_s12   ;;  %p1372_p8 = scmp.ne.s32.totalorder %s1369_s25, 0 }
 0x213   : > { %p1373_p10 = scmp.ge.s32.totalorder %s1093_s15, 2  ;;  %s736_s11 = scalar_lea.sflag [#allocation4], %s735_s9 }
 0x215   : > { %p956_p0 = pnand %p1373_p10, %p1372_p8 }
 0x217   : > { %1076 = dma.done.wait (!%p956_p0), %s736_s11, 2048  }
 0x218   : > { %1078 = vsyncadd (!%p956_p0), %s736_s11, 4294965248  ;;  %p16_p2 = scmp.ge.s32.totalorder %s1146_s18, 4   ;;  %s1374_s12 = smov %s1085_s13 }
 0x219   : > { %s1375_s13 = smov %s1089_s14  ;;  %s1376_s14 = smov %s1158_s21 }
 0x21a   : > { %s1377_s15 = smov %s1146_s18  ;;  %18 = sbr.rel (!%p16_p2) target bundleno = 5 (0x5), region = 77 }
 0x221   :  { %741 = vsyncpa [#allocation3], 1 }
 0x222   :  { %743 = vsyncpa [#allocation3 + $0x1], 1 }
 0x223   :  { %744 = vsyncpa [#allocation4], 1 }
 0x224   :  { %746 = vsyncpa [#allocation4 + $0x1], 1 }

</bundles_post_ra>
